<compile_context>
chip_gen: v7x
topology: tpu7x:2x2x1
jax: 0.10.0
libtpu: 0.0.40
codegen_flags: <defaults>
</compile_context>

<pallas_src>
import math

import jax
import jax.numpy as jnp
from jax import lax
from jax.experimental import pallas as pl
from jax.experimental.pallas import tpu as pltpu

_LANES = 128
_GRANULE_ROWS = 16                    # per-tensor padding granule, in rows (bf16 tile safe)
_GRANULE = _GRANULE_ROWS * _LANES     # 2048 elements
_SUBCHUNK_ROWS = 512                  # static sub-slice for the vectorized folds (256 KiB f32)
_DEFAULT_BLOCK_ROWS = 8192            # 4 MiB f32 / 2 MiB bf16 per block
_VMEM_LIMIT_BYTES = 32 * 1024 * 1024  # raise v5e's 16 MiB scoped default; no-op on v6e/v7x


def _round_up(x, m):
    return (x + m - 1) // m * m


def _choose_block_rows(requested, rows_total):
    if requested is None:
        requested = _DEFAULT_BLOCK_ROWS
    requested = max(_GRANULE_ROWS, _round_up(int(requested), _GRANULE_ROWS))
    if rows_total > _SUBCHUNK_ROWS:
        cap = _round_up(rows_total, _SUBCHUNK_ROWS)
    else:
        cap = _round_up(rows_total, _GRANULE_ROWS)
    br = min(requested, cap)
    # Blocks larger than one sub-chunk must be a multiple of it (static in-kernel loop).
    if br > _SUBCHUNK_ROWS:
        br = _round_up(br, _SUBCHUNK_ROWS)
    return br


def _reg_kernel(nseg_ref, soff_ref, slo_ref, shi_ref, scl_ref,   # scalar prefetch (SMEM)
                wd_ref, x_ref,                                   # weight_decay (SMEM), block (VMEM)
                o_ref,                                           # (1, 1) scalar output
                abs_acc, sq_acc, l2_acc):                        # VMEM scratch accumulators
    i = pl.program_id(0)

    @pl.when(i == 0)
    def _init():
        abs_acc[...] = jnp.zeros_like(abs_acc)
        sq_acc[...] = jnp.zeros_like(sq_acc)
        l2_acc[...] = jnp.zeros_like(l2_acc)

    bm = x_ref.shape[0]
    sub = min(_SUBCHUNK_ROWS, bm)
    nsub = bm // sub                       # static; bm is a multiple of sub by construction
    nseg = nseg_ref[i]

    def _fold(v):                          # (r, 128) -> (8, 128) vreg-sized tree fold
        return jnp.sum(v.reshape(-1, 8, _LANES), axis=0)

    # ---- Fast path: block lies in the interior of a single tensor (most blocks of
    # large conv/fc weights).  No masks, no sqrt: pure streaming folds. ----
    @pl.when(nseg == 0)
    def _interior_block():
        for s in range(nsub):              # static, unrolled
            xs = x_ref[pl.ds(s * sub, sub), :].astype(jnp.float32)
            abs_acc[...] += _fold(jnp.abs(xs))
            sq_acc[...] += _fold(xs * xs)

    # ---- Boundary path: one or more tensors start/end inside this block. ----
    @pl.when(nseg > 0)
    def _boundary_block():
        # L1 is global and unmasked (per-tensor zero padding is norm preserving).
        for s in range(nsub):
            xs = x_ref[pl.ds(s * sub, sub), :].astype(jnp.float32)
            abs_acc[...] += _fold(jnp.abs(xs))

        # L2 needs per-tensor sums: walk this block's segments.  Work per segment is
        # proportional to the segment size (16-row pieces), not the block size.
        soff = soff_ref[i]

        def seg_body(s, carry):
            glo = slo_ref[soff + s]
            npieces = shi_ref[soff + s] - glo

            def piece_body(p, c):
                row = pl.multiple_of((glo + p) * _GRANULE_ROWS, _GRANULE_ROWS)
                v = x_ref[pl.ds(row, _GRANULE_ROWS), :].astype(jnp.float32)
                sq_acc[...] += _fold(v * v)
                return c

            lax.fori_loop(0, npieces, piece_body, 0)

            # Tensor ends here: one cross-lane reduce + sqrt per TENSOR.
            @pl.when(scl_ref[soff + s] == 1)
            def _close_tensor():
                l2_acc[...] += jnp.sqrt(jnp.sum(sq_acc[...]))
                sq_acc[...] = jnp.zeros_like(sq_acc)

            return carry

        lax.fori_loop(0, nseg, seg_body, 0)

    # ---- Finalize.  Order after the segment walk is load-bearing: the last tensor's
    # L2 must already be folded into l2_acc. ----
    @pl.when(i == pl.num_programs(0) - 1)
    def _finalize():
        o_ref[...] = wd_ref[0] * (jnp.sum(abs_acc[...]) + l2_acc[...])


def pack_weights(weight_list, block_rows=None):
    """One-time packing (do this OUTSIDE the training step; weight shapes are static).

    Returns (packed_2d, tables, block_rows):
      packed_2d : (rows, 128) buffer in the weights' native dtype (bf16 if all weights
                  are bf16, else f32); each tensor zero-padded to a 2048-element granule.
      tables    : int32 arrays (blk_nseg, blk_soff, seg_lo, seg_hi, seg_close) — per-block
                  segment count/offset plus flat per-segment [lo, hi) granule range within
                  the block and a 'tensor ends here' flag.  blk_nseg == 0 marks an
                  interior fast-path block.
    """
    sizes = [int(math.prod(jnp.shape(w))) for _, w in weight_list]
    assert len(sizes) > 0 and all(s > 0 for s in sizes), "no weight parameters found"

    dtypes = {jnp.dtype(w.dtype) for _, w in weight_list}
    pack_dtype = jnp.bfloat16 if dtypes == {jnp.dtype(jnp.bfloat16)} else jnp.float32

    padded_sizes = [_round_up(s, _GRANULE) for s in sizes]
    total = int(sum(padded_sizes))
    rows_total = total // _LANES
    block_rows = _choose_block_rows(block_rows, rows_total)
    block_elems = block_rows * _LANES

    padded_total = _round_up(total, block_elems)
    num_blocks = padded_total // block_elems

    flats = []
    for (_, w), s, ps in zip(weight_list, sizes, padded_sizes):
        f = jnp.ravel(w).astype(pack_dtype)
        if ps > s:
            f = jnp.pad(f, (0, ps - s))
        flats.append(f)
    packed = jnp.concatenate(flats)
    if padded_total > total:
        packed = jnp.pad(packed, (0, padded_total - total))
    packed = packed.reshape(padded_total // _LANES, _LANES)

    # Per-block segment tables, in units of 16-row granule groups.
    gpb = block_rows // _GRANULE_ROWS
    block_segments = [[] for _ in range(num_blocks)]
    g = 0
    for ps in padded_sizes:
        g_end = g + ps // _GRANULE
        b0, b1 = g // gpb, (g_end - 1) // gpb
        for b in range(b0, b1 + 1):
            base = b * gpb
            lo = max(0, g - base)
            hi = min(gpb, g_end - base)
            block_segments[b].append((lo, hi, 1 if b == b1 else 0))
        g = g_end

    blk_nseg, blk_soff = [], []
    seg_lo, seg_hi, seg_close = [], [], []
    for segs in block_segments:
        if len(segs) == 1 and segs[0] == (0, gpb, 0):
            blk_nseg.append(0)          # interior fast-path block: no segment records
            blk_soff.append(0)
        else:
            blk_nseg.append(len(segs))
            blk_soff.append(len(seg_lo))
            for lo, hi, cl in segs:
                seg_lo.append(lo)
                seg_hi.append(hi)
                seg_close.append(cl)
    if not seg_lo:                      # cannot happen (last tensor always closes); be safe
        seg_lo, seg_hi, seg_close = [0], [0], [0]

    tables = tuple(jnp.asarray(t, dtype=jnp.int32)
                   for t in (blk_nseg, blk_soff, seg_lo, seg_hi, seg_close))
    return packed, tables, block_rows


def regularization_loss_packed(packed, tables, weight_decay, block_rows):
    """Hot path: single streaming Pallas reduction over the pre-packed weight buffer."""
    blk_nseg, blk_soff, seg_lo, seg_hi, seg_close = tables
    rows = packed.shape[0]
    num_blocks = rows // block_rows
    wd = jnp.asarray([weight_decay], dtype=jnp.float32)

    total_elems = int(packed.size)
    cost = pl.CostEstimate(
        flops=6 * total_elems,
        transcendentals=int(seg_lo.shape[0]),
        bytes_accessed=total_elems * packed.dtype.itemsize + 4,
    )

    grid_spec = pltpu.PrefetchScalarGridSpec(
        num_scalar_prefetch=5,
        grid=(num_blocks,),
        in_specs=[
            pl.BlockSpec(memory_space=pltpu.SMEM),                        # weight_decay (1,)
            pl.BlockSpec((block_rows, _LANES), lambda i, *_: (i, 0)),     # packed block
        ],
        out_specs=pl.BlockSpec((1, 1), lambda i, *_: (0, 0)),
        scratch_shapes=[
            pltpu.VMEM((8, _LANES), jnp.float32),   # running sum |w|        (vreg sized)
            pltpu.VMEM((8, _LANES), jnp.float32),   # running sum w^2 (per current tensor)
            pltpu.VMEM((1, 1), jnp.float32),        # running sum of per-tensor L2 norms
        ],
    )
    out = pl.pallas_call(
        _reg_kernel,
        out_shape=jax.ShapeDtypeStruct((1, 1), jnp.float32),
        grid_spec=grid_spec,
        cost_estimate=cost,
        compiler_params=pltpu.CompilerParams(
            dimension_semantics=("arbitrary",),     # accumulators carried across the grid
            vmem_limit_bytes=_VMEM_LIMIT_BYTES,
        ),
    )(blk_nseg, blk_soff, seg_lo, seg_hi, seg_close, wd, packed)
    return out[0, 0]


def regularization_loss(weight_list, weight_decay, block_rows=None):
    """Convenience wrapper: pack + reduce.  In a training loop, call pack_weights()
    once and reuse its outputs with regularization_loss_packed()."""
    packed, tables, block_rows = pack_weights(weight_list, block_rows)
    return regularization_loss_packed(packed, tables, weight_decay, block_rows)


def _get_weight(params):
    """Mirror of Regularization.get_weight: keep params whose name contains 'weight'."""
    return [(name, p) for name, p in params.items() if "weight" in name]


def _reference(weight_list, weight_decay):
    reg = jnp.float32(0.0)
    for _, w in weight_list:
        wf = jnp.ravel(w).astype(jnp.float32)
        reg = reg + jnp.sqrt(jnp.sum(wf * wf)) + jnp.sum(jnp.abs(wf))
    return weight_decay * reg


if __name__ == "__main__":
    key = jax.random.PRNGKey(0)
    ks = jax.random.split(key, 7)

    # Deterministic synthetic "model" parameters (small res2net-like slice).
    # Biases are present but filtered out, exactly like the PyTorch module.
    params = {
        "conv1.weight": jax.random.normal(ks[0], (16, 8, 3, 3), dtype=jnp.float32) * 0.1,
        "bn1.weight": jax.random.normal(ks[1], (16,), dtype=jnp.float32) * 0.1 + 1.0,
        "bn1.bias": jax.random.normal(ks[2], (16,), dtype=jnp.float32) * 0.1,
        "layer1.0.conv1.weight": jax.random.normal(ks[3], (32, 16, 3, 3), dtype=jnp.float32) * 0.05,
        "layer1.0.bn1.weight": jax.random.normal(ks[4], (32,), dtype=jnp.float32) * 0.1 + 1.0,
        "fc.weight": jax.random.normal(ks[5], (10, 64), dtype=jnp.float32) * 0.1,
        "fc.bias": jax.random.normal(ks[6], (10,), dtype=jnp.float32) * 0.1,
    }
    weight_decay = 0.01
    weight_list = _get_weight(params)
    ref = _reference(weight_list, weight_decay)

    # (a) Default block size: single block here, exercises the segment (boundary) path,
    #     including a multi-granule tensor.
    loss_a = jax.block_until_ready(regularization_loss(weight_list, weight_decay))
    assert jnp.allclose(loss_a, ref, rtol=1e-5, atol=1e-6), (loss_a, ref)

    # (b) Tiny blocks: forces a multi-block grid and exercises the interior fast path.
    loss_b = jax.block_until_ready(
        regularization_loss(weight_list, weight_decay, block_rows=16))
    assert jnp.allclose(loss_b, ref, rtol=1e-5, atol=1e-6), (loss_b, ref)

    # (c) Native bf16 packing path (half the HBM traffic); accumulation stays f32.
    bf16_list = [(n, w.astype(jnp.bfloat16)) for n, w in weight_list]
    ref_bf16 = _reference(bf16_list, weight_decay)
    loss_c = jax.block_until_ready(regularization_loss(bf16_list, weight_decay))
    assert jnp.allclose(loss_c, ref_bf16, rtol=1e-4, atol=1e-5), (loss_c, ref_bf16)

    print("KERNEL_OK")
</pallas_src>

<mosaic_0001>
module attributes {stable_mosaic.version = 11 : i64} {
  func.func @_reg_kernel(%arg0: i32, %arg1: memref<1xi32, #tpu.memory_space<smem>>, %arg2: memref<1xi32, #tpu.memory_space<smem>>, %arg3: memref<5xi32, #tpu.memory_space<smem>>, %arg4: memref<5xi32, #tpu.memory_space<smem>>, %arg5: memref<5xi32, #tpu.memory_space<smem>>, %arg6: memref<1xf32, #tpu.memory_space<smem>>, %arg7: memref<112x128xf32, #tpu.memory_space<vmem>>, %arg8: memref<1x1xf32, #tpu.memory_space<vmem>>, %arg9: memref<8x128xf32, #tpu.memory_space<vmem>>, %arg10: memref<8x128xf32, #tpu.memory_space<vmem>>, %arg11: memref<1x1xf32, #tpu.memory_space<vmem>>) attributes {dimension_semantics = [#tpu.dimension_semantics<arbitrary>], iteration_bounds = array<i64: 1>, scalar_prefetch = 5 : i64, scratch_operands = 3 : i64, tpu.core_type = #tpu.core_type<tc>, window_params = [{transform_indices = @transform_0, window_bounds = array<i64: 1>}, {transform_indices = @transform_1, window_bounds = array<i64: 112, 128>}, {pipeline_mode = #tpu.pipeline_mode<synchronous>, transform_indices = @transform_2, window_bounds = array<i64: 1, 1>}]} {
    %c0_i32 = arith.constant 0 : i32
    %0 = arith.cmpi eq, %arg0, %c0_i32 : i32
    %1 = arith.extui %0 : i1 to i32
    %c0_i32_0 = arith.constant 0 : i32
    %2 = arith.cmpi ne, %1, %c0_i32_0 : i32
    scf.if %2 {
      %cst = arith.constant 0.000000e+00 : f32
      %14 = vector.broadcast %cst : f32 to vector<8x128xf32>
      %c0 = arith.constant 0 : index
      %c0_7 = arith.constant 0 : index
      %15 = vector.load %arg9[%c0, %c0_7] : memref<8x128xf32, #tpu.memory_space<vmem>>, vector<8x128xf32>
      tpu.vector_store %arg9[%c0, %c0_7], %14 {strides = array<i32>} : memref<8x128xf32, #tpu.memory_space<vmem>>, vector<8x128xf32>,
      %cst_8 = arith.constant 0.000000e+00 : f32
      %16 = vector.broadcast %cst_8 : f32 to vector<8x128xf32>
      %c0_9 = arith.constant 0 : index
      %c0_10 = arith.constant 0 : index
      %17 = vector.load %arg10[%c0_9, %c0_10] : memref<8x128xf32, #tpu.memory_space<vmem>>, vector<8x128xf32>
      tpu.vector_store %arg10[%c0_9, %c0_10], %16 {strides = array<i32>} : memref<8x128xf32, #tpu.memory_space<vmem>>, vector<8x128xf32>,
      %cst_11 = arith.constant 0.000000e+00 : f32
      %18 = vector.broadcast %cst_11 : f32 to vector<1x1xf32>
      %c0_12 = arith.constant 0 : index
      %c0_13 = arith.constant 0 : index
      %19 = vector.load %arg11[%c0_12, %c0_13] : memref<1x1xf32, #tpu.memory_space<vmem>>, vector<1x1xf32>
      tpu.vector_store %arg11[%c0_12, %c0_13], %18 {strides = array<i32>} : memref<1x1xf32, #tpu.memory_space<vmem>>, vector<1x1xf32>,
    } else {
    }
    %3 = arith.index_cast %arg0 : i32 to index
    %4 = memref.load %arg1[%3] : memref<1xi32, #tpu.memory_space<smem>>
    %c0_i32_1 = arith.constant 0 : i32
    %5 = arith.cmpi eq, %4, %c0_i32_1 : i32
    %6 = arith.extui %5 : i1 to i32
    %c0_i32_2 = arith.constant 0 : i32
    %7 = arith.cmpi ne, %6, %c0_i32_2 : i32
    scf.if %7 {
      %c0 = arith.constant 0 : index
      %c0_7 = arith.constant 0 : index
      %14 = vector.load %arg7[%c0, %c0_7] : memref<112x128xf32, #tpu.memory_space<vmem>>, vector<112x128xf32>
      %c0_8 = arith.constant 0 : index
      %c0_9 = arith.constant 0 : index
      %15 = vector.load %arg9[%c0_8, %c0_9] : memref<8x128xf32, #tpu.memory_space<vmem>>, vector<8x128xf32>
      %16 = math.absf %14 : vector<112x128xf32>
      %17 = vector.shape_cast %16 : vector<112x128xf32> to vector<14x8x128xf32>
      %cst = arith.constant dense<0.000000e+00> : vector<8x128xf32>
      %18 = vector.multi_reduction <add>, %17, %cst [0] : vector<14x8x128xf32> to vector<8x128xf32>
      %19 = arith.addf %15, %18 : vector<8x128xf32>
      %c0_10 = arith.constant 0 : index
      %c0_11 = arith.constant 0 : index
      %20 = vector.load %arg9[%c0_10, %c0_11] : memref<8x128xf32, #tpu.memory_space<vmem>>, vector<8x128xf32>
      tpu.vector_store %arg9[%c0_10, %c0_11], %19 {strides = array<i32>} : memref<8x128xf32, #tpu.memory_space<vmem>>, vector<8x128xf32>,
      %c0_12 = arith.constant 0 : index
      %c0_13 = arith.constant 0 : index
      %21 = vector.load %arg10[%c0_12, %c0_13] : memref<8x128xf32, #tpu.memory_space<vmem>>, vector<8x128xf32>
      %22 = arith.mulf %14, %14 : vector<112x128xf32>
      %23 = vector.shape_cast %22 : vector<112x128xf32> to vector<14x8x128xf32>
      %cst_14 = arith.constant dense<0.000000e+00> : vector<8x128xf32>
      %24 = vector.multi_reduction <add>, %23, %cst_14 [0] : vector<14x8x128xf32> to vector<8x128xf32>
      %25 = arith.addf %21, %24 : vector<8x128xf32>
      %c0_15 = arith.constant 0 : index
      %c0_16 = arith.constant 0 : index
      %26 = vector.load %arg10[%c0_15, %c0_16] : memref<8x128xf32, #tpu.memory_space<vmem>>, vector<8x128xf32>
      tpu.vector_store %arg10[%c0_15, %c0_16], %25 {strides = array<i32>} : memref<8x128xf32, #tpu.memory_space<vmem>>, vector<8x128xf32>,
    } else {
    }
    %c0_i32_3 = arith.constant 0 : i32
    %8 = arith.cmpi sgt, %4, %c0_i32_3 : i32
    %9 = arith.extui %8 : i1 to i32
    %c0_i32_4 = arith.constant 0 : i32
    %10 = arith.cmpi ne, %9, %c0_i32_4 : i32
    scf.if %10 {
      %c0 = arith.constant 0 : index
      %c0_7 = arith.constant 0 : index
      %14 = vector.load %arg7[%c0, %c0_7] : memref<112x128xf32, #tpu.memory_space<vmem>>, vector<112x128xf32>
      %c0_8 = arith.constant 0 : index
      %c0_9 = arith.constant 0 : index
      %15 = vector.load %arg9[%c0_8, %c0_9] : memref<8x128xf32, #tpu.memory_space<vmem>>, vector<8x128xf32>
      %16 = math.absf %14 : vector<112x128xf32>
      %17 = vector.shape_cast %16 : vector<112x128xf32> to vector<14x8x128xf32>
      %cst = arith.constant dense<0.000000e+00> : vector<8x128xf32>
      %18 = vector.multi_reduction <add>, %17, %cst [0] : vector<14x8x128xf32> to vector<8x128xf32>
      %19 = arith.addf %15, %18 : vector<8x128xf32>
      %c0_10 = arith.constant 0 : index
      %c0_11 = arith.constant 0 : index
      %20 = vector.load %arg9[%c0_10, %c0_11] : memref<8x128xf32, #tpu.memory_space<vmem>>, vector<8x128xf32>
      tpu.vector_store %arg9[%c0_10, %c0_11], %19 {strides = array<i32>} : memref<8x128xf32, #tpu.memory_space<vmem>>, vector<8x128xf32>,
      %21 = arith.index_cast %arg0 : i32 to index
      %22 = memref.load %arg2[%21] : memref<1xi32, #tpu.memory_space<smem>>
      %c0_i32_12 = arith.constant 0 : i32
      %c0_i32_13 = arith.constant 0 : i32
      %23 = arith.subi %4, %c0_i32_13 : i32
      %24 = arith.addi %c0_i32_13, %23 : i32
      %c1_i32 = arith.constant 1 : i32
      scf.for %arg12 = %c0_i32_13 to %24 step %c1_i32  : i32 {
        %25 = arith.addi %22, %arg12 : i32
        %26 = arith.index_cast %25 : i32 to index
        %27 = memref.load %arg3[%26] : memref<5xi32, #tpu.memory_space<smem>>
        %28 = arith.addi %22, %arg12 : i32
        %29 = arith.index_cast %28 : i32 to index
        %30 = memref.load %arg4[%29] : memref<5xi32, #tpu.memory_space<smem>>
        %31 = arith.subi %30, %27 : i32
        %c0_i32_14 = arith.constant 0 : i32
        %c0_i32_15 = arith.constant 0 : i32
        %32 = arith.subi %31, %c0_i32_15 : i32
        %33 = arith.addi %c0_i32_15, %32 : i32
        %c1_i32_16 = arith.constant 1 : i32
        scf.for %arg13 = %c0_i32_15 to %33 step %c1_i32_16  : i32 {
          %40 = arith.addi %27, %arg13 : i32
          %c16_i32 = arith.constant 16 : i32
          %41 = arith.muli %40, %c16_i32 : i32
          %42 = tpu.assume_multiple %41, 16 : i32
          %43 = arith.index_cast %42 : i32 to index
          %c0_19 = arith.constant 0 : index
          %44 = vector.load %arg7[%43, %c0_19] : memref<112x128xf32, #tpu.memory_space<vmem>>, vector<16x128xf32>
          %c0_20 = arith.constant 0 : index
          %c0_21 = arith.constant 0 : index
          %45 = vector.load %arg10[%c0_20, %c0_21] : memref<8x128xf32, #tpu.memory_space<vmem>>, vector<8x128xf32>
          %46 = arith.mulf %44, %44 : vector<16x128xf32>
          %47 = vector.shape_cast %46 : vector<16x128xf32> to vector<2x8x128xf32>
          %cst_22 = arith.constant dense<0.000000e+00> : vector<8x128xf32>
          %48 = vector.multi_reduction <add>, %47, %cst_22 [0] : vector<2x8x128xf32> to vector<8x128xf32>
          %49 = arith.addf %45, %48 : vector<8x128xf32>
          %c0_23 = arith.constant 0 : index
          %c0_24 = arith.constant 0 : index
          %50 = vector.load %arg10[%c0_23, %c0_24] : memref<8x128xf32, #tpu.memory_space<vmem>>, vector<8x128xf32>
          tpu.vector_store %arg10[%c0_23, %c0_24], %49 {strides = array<i32>} : memref<8x128xf32, #tpu.memory_space<vmem>>, vector<8x128xf32>,
        }
        %34 = arith.addi %22, %arg12 : i32
        %35 = arith.index_cast %34 : i32 to index
        %36 = memref.load %arg5[%35] : memref<5xi32, #tpu.memory_space<smem>>
        %c1_i32_17 = arith.constant 1 : i32
        %37 = arith.cmpi eq, %36, %c1_i32_17 : i32
        %38 = arith.extui %37 : i1 to i32
        %c0_i32_18 = arith.constant 0 : i32
        %39 = arith.cmpi ne, %38, %c0_i32_18 : i32
        scf.if %39 {
          %c0_19 = arith.constant 0 : index
          %c0_20 = arith.constant 0 : index
          %40 = vector.load %arg11[%c0_19, %c0_20] : memref<1x1xf32, #tpu.memory_space<vmem>>, vector<1x1xf32>
          %c0_21 = arith.constant 0 : index
          %c0_22 = arith.constant 0 : index
          %41 = vector.load %arg10[%c0_21, %c0_22] : memref<8x128xf32, #tpu.memory_space<vmem>>, vector<8x128xf32>
          %42 = vector.shape_cast %41 : vector<8x128xf32> to vector<1x8x128xf32>
          %cst_23 = arith.constant dense<0.000000e+00> : vector<1xf32>
          %43 = vector.multi_reduction <add>, %42, %cst_23 [1, 2] : vector<1x8x128xf32> to vector<1xf32>
          %44 = vector.shape_cast %43 : vector<1xf32> to vector<1x1x1xf32>
          %45 = vector.extract %44[0, 0, 0] : f32 from vector<1x1x1xf32>
          %46 = math.sqrt %45 : f32
          %47 = vector.broadcast %46 : f32 to vector<1x1xf32>
          %48 = arith.addf %40, %47 : vector<1x1xf32>
          %c0_24 = arith.constant 0 : index
          %c0_25 = arith.constant 0 : index
          %49 = vector.load %arg11[%c0_24, %c0_25] : memref<1x1xf32, #tpu.memory_space<vmem>>, vector<1x1xf32>
          tpu.vector_store %arg11[%c0_24, %c0_25], %48 {strides = array<i32>} : memref<1x1xf32, #tpu.memory_space<vmem>>, vector<1x1xf32>,
          %cst_26 = arith.constant 0.000000e+00 : f32
          %50 = vector.broadcast %cst_26 : f32 to vector<8x128xf32>
          %c0_27 = arith.constant 0 : index
          %c0_28 = arith.constant 0 : index
          %51 = vector.load %arg10[%c0_27, %c0_28] : memref<8x128xf32, #tpu.memory_space<vmem>>, vector<8x128xf32>
          tpu.vector_store %arg10[%c0_27, %c0_28], %50 {strides = array<i32>} : memref<8x128xf32, #tpu.memory_space<vmem>>, vector<8x128xf32>,
        } else {
        }
      }
    } else {
    }
    %c0_i32_5 = arith.constant 0 : i32
    %11 = arith.cmpi eq, %arg0, %c0_i32_5 : i32
    %12 = arith.extui %11 : i1 to i32
    %c0_i32_6 = arith.constant 0 : i32
    %13 = arith.cmpi ne, %12, %c0_i32_6 : i32
    scf.if %13 {
      %c0 = arith.constant 0 : index
      %14 = memref.load %arg6[%c0] : memref<1xf32, #tpu.memory_space<smem>>
      %c0_7 = arith.constant 0 : index
      %c0_8 = arith.constant 0 : index
      %15 = vector.load %arg9[%c0_7, %c0_8] : memref<8x128xf32, #tpu.memory_space<vmem>>, vector<8x128xf32>
      %16 = vector.shape_cast %15 : vector<8x128xf32> to vector<1x8x128xf32>
      %cst = arith.constant dense<0.000000e+00> : vector<1xf32>
      %17 = vector.multi_reduction <add>, %16, %cst [1, 2] : vector<1x8x128xf32> to vector<1xf32>
      %18 = vector.shape_cast %17 : vector<1xf32> to vector<1x1x1xf32>
      %19 = vector.extract %18[0, 0, 0] : f32 from vector<1x1x1xf32>
      %c0_9 = arith.constant 0 : index
      %c0_10 = arith.constant 0 : index
      %20 = vector.load %arg11[%c0_9, %c0_10] : memref<1x1xf32, #tpu.memory_space<vmem>>, vector<1x1xf32>
      %21 = vector.broadcast %19 : f32 to vector<1x1xf32>
      %22 = arith.addf %21, %20 : vector<1x1xf32>
      %23 = vector.broadcast %14 : f32 to vector<1x1xf32>
      %24 = arith.mulf %23, %22 : vector<1x1xf32>
      %c0_11 = arith.constant 0 : index
      %c0_12 = arith.constant 0 : index
      %25 = vector.load %arg8[%c0_11, %c0_12] : memref<1x1xf32, #tpu.memory_space<vmem>>, vector<1x1xf32>
      tpu.vector_store %arg8[%c0_11, %c0_12], %24 {strides = array<i32>} : memref<1x1xf32, #tpu.memory_space<vmem>>, vector<1x1xf32>,
    } else {
    }
    return
  }
  func.func @transform_0(%arg0: i32, %arg1: memref<1xi32, #tpu.memory_space<smem>>, %arg2: memref<1xi32, #tpu.memory_space<smem>>, %arg3: memref<5xi32, #tpu.memory_space<smem>>, %arg4: memref<5xi32, #tpu.memory_space<smem>>, %arg5: memref<5xi32, #tpu.memory_space<smem>>) -> i32 {
    %c0_i32 = arith.constant 0 : i32
    %c0_i32_0 = arith.constant 0 : i32
    return %c0_i32 : i32
  }
  func.func @transform_1(%arg0: i32, %arg1: memref<1xi32, #tpu.memory_space<smem>>, %arg2: memref<1xi32, #tpu.memory_space<smem>>, %arg3: memref<5xi32, #tpu.memory_space<smem>>, %arg4: memref<5xi32, #tpu.memory_space<smem>>, %arg5: memref<5xi32, #tpu.memory_space<smem>>) -> (i32, i32) {
    %c0_i32 = arith.constant 0 : i32
    %c0_i32_0 = arith.constant 0 : i32
    return %arg0, %c0_i32 : i32, i32
  }
  func.func @transform_2(%arg0: i32, %arg1: memref<1xi32, #tpu.memory_space<smem>>, %arg2: memref<1xi32, #tpu.memory_space<smem>>, %arg3: memref<5xi32, #tpu.memory_space<smem>>, %arg4: memref<5xi32, #tpu.memory_space<smem>>, %arg5: memref<5xi32, #tpu.memory_space<smem>>) -> (i32, i32) {
    %c0_i32 = arith.constant 0 : i32
    %c0_i32_0 = arith.constant 0 : i32
    %c0_i32_1 = arith.constant 0 : i32
    return %c0_i32, %c0_i32_0 : i32, i32
  }
}

</mosaic_0001>

<bundles_post_ra>
// kernel: tpu_custom_call.1
= control target key start
LH: loop header
LB: loop body
LE: loop exit
PB: predicated region body
PF: predicated region fallthrough
CT: control target
= control target key end

     0   :  { %s551_s0 = inlined_call_operand.<no memory space> [shape: s32[1], index: 0, kind: input, shape index: {}]   ;;  %s552_s1 = inlined_call_operand.<no memory space> [shape: s32[1], index: 1, kind: input, shape index: {}]   ;;  %s553_s2 = inlined_call_operand.vmem [shape: s32[5], index: 2, kind: input, shape index: {}]   ;;  %s554_s6 = inlined_call_operand.hbm [shape: f32[112,128], index: 6, kind: input, shape index: {}]   ;;  %s555_s7 = inlined_call_operand.hbm [shape: f32[1,1], index: 7, kind: output, shape index: {}]   ;;  %s556_s3 = inlined_call_operand.vmem [shape: s32[5], index: 3, kind: input, shape index: {}]   ;;  %s557_s4 = inlined_call_operand.vmem [shape: s32[5], index: 4, kind: input, shape index: {}]   ;;  %s558_s5 = inlined_call_operand.<no memory space> [shape: f32[1], index: 5, kind: input, shape index: {}]  }
   0x1   :  { %13 = sst [smem:[#allocation7]] %s552_s1  ;;  %s14_s28 = sshll.u32 %s553_s2, 4  ;;  %s15_s28 = int_to_ptr.vmem [resolvable:$true] %s14_s28 }
   0x2   :  { %s18_s8 = sshll.u32 %s556_s3, 4  ;;  %s329_s9 = scalar_lea.vmem %s15_s28, 16  ;;  %s19_s8 = int_to_ptr.vmem [resolvable:$true] %s18_s8 }
   0x3   :  { %p330_p0 = scmp.ne.s32.totalorder %s15_s28, %s329_s9  ;;  %p334_p1 = scmp.lt.s32.totalorder %s15_s28, %s15_s28 }
   0x4   :  { %p335_p2 = scmp.lt.s32.totalorder %s329_s9, %s329_s9 }
   0x6   :  { %p336_p3 = por %p335_p2, %p334_p1 }
   0x8   :  { %p337_p4 = pnand %p336_p3, %p330_p0 }
   0xa   :  { %340 = shalt.err (!%p337_p4)  }
   0xb   :  { %s431_s10 = smov [#allocation8]   ;;  %s22_s12 = sshll.u32 %s557_s4, 4  ;;  %s23_s12 = int_to_ptr.vmem [resolvable:$true] %s22_s12 }
   0xc   :  { %17 = dma.vmem_to_smem %s15_s28, 16, %s431_s10, [#allocation5] }
   0xd   :  { %s341_s2 = scalar_lea.vmem %s19_s8, 16  ;;  %p346_p6 = scmp.lt.s32.totalorder %s19_s8, %s19_s8 }
   0xe   :  { %p342_p5 = scmp.ne.s32.totalorder %s19_s8, %s341_s2  ;;  %p347_p7 = scmp.lt.s32.totalorder %s341_s2, %s341_s2 }
  0x10   :  { %p348_p8 = por %p347_p7, %p346_p6 }
  0x12   :  { %p349_p9 = pnand %p348_p8, %p342_p5 }
  0x14   :  { %352 = shalt.err (!%p349_p9)  }
  0x15   :  { %s432_s3 = smov [#allocation9]   ;;  %s353_s13 = scalar_lea.vmem %s23_s12, 16 }
  0x16   :  { %21 = dma.vmem_to_smem %s19_s8, 16, %s432_s3, [#allocation5] }
  0x17   :  { %p354_p10 = scmp.ne.s32.totalorder %s23_s12, %s353_s13  ;;  %p358_p11 = scmp.lt.s32.totalorder %s23_s12, %s23_s12 }
  0x18   :  { %p359_p12 = scmp.lt.s32.totalorder %s353_s13, %s353_s13 }
  0x1a   :  { %p360_p13 = por %p359_p12, %p358_p11 }
  0x1c   :  { %p361_p0 = pnand %p360_p13, %p354_p10 }
  0x1e   :  { %364 = shalt.err (!%p361_p0)  }
  0x1f   :  { %s433_s14 = smov [#allocation10]   ;;  %26 = sst [smem:[#allocation11]] %s558_s5 }
  0x20   :  { %25 = dma.vmem_to_smem %s23_s12, 16, %s433_s14, [#allocation5] }
  0x21   :  { %417 = dma.done.wait [#allocation5], 48 }
  0x22   :  { %418 = vsyncadd [#allocation5], 4294967248 }
  0x23   :  { %28 = sfence }
  0x24   :  { %29 = vsyncpa [#allocation13], 0 }
  0x25   :  { %30 = vsyncpa [#allocation14], 0  ;;  %s434_s16 = smov [#allocation12]   ;;  %s365_s20 = scalar_lea.hbm %s554_s6, 1792 }
  0x26   :  { %s38_s17 = sshll.u32 %s434_s16, 4  ;;  %p366_p1 = scmp.ne.s32.totalorder %s554_s6, %s365_s20  ;;  %s39_s17 = int_to_ptr.vmem [resolvable:$true] %s38_s17 }
  0x27   :  { %p369_p2 = scmp.lt.u32.totalorder %s365_s20, %s554_s6 }
  0x29   :  { %p371_p3 = pnand %p369_p2, %p366_p1 }
  0x2b   :  { %374 = shalt.err (!%p371_p3)
}
  0x2c   :  { %s375_s5 = scalar_lea.vmem %s39_s17, 1792  ;;  %p380_p5 = scmp.lt.s32.totalorder %s39_s17, %s39_s17 }
  0x2d   :  { %p376_p4 = scmp.ne.s32.totalorder %s39_s17, %s375_s5  ;;  %p381_p6 = scmp.lt.s32.totalorder %s375_s5, %s375_s5 }
  0x2f   :  { %p382_p7 = por %p381_p6, %p380_p5 }
  0x31   :  { %p383_p8 = pnand %p382_p7, %p376_p4 }
  0x33   :  { %386 = shalt.err (!%p383_p8)
}
  0x34   :  { %s435_s25 = smov 128   ;;  %s436_s26 = smov 8  }
  0x35   :  { %44 = dma.hbm_to_vmem [thread:$0]  %s554_s6, 1792, %s39_s17, [#allocation13], %s435_s25, %s435_s25, %s436_s26  }
  0x36   :  { %419 = dma.done.wait [#allocation13], 1792  }
  0x37   :  { %420 = vsyncadd [#allocation13], 4294965504  ;;  %vm54_vm0 = vcmask 0   ;;  %v437_v0 = vmov 0.0   ;;  %p290_p9 = scmp.ne.s32.totalorder %s551_s0, 0 }
  0x38   :  { %52 = vst [vmem:[#allocation2] sm:$0xff] %v437_v0  ;;  %53 = vst [vmem:[#allocation3] sm:$0xff] %v437_v0  ;;  %v61_v1 = vld [vmem:[#allocation12] sm:$0xff] (!%p290_p9)  ;;  %v62_v2 = vld [vmem:[#allocation12 + $0x8] sm:$0xff] (!%p290_p9) }
  0x39   :  { %55 = vst.msk [vmem:[#allocation4] sm:$0x1] %vm54_vm0, %v437_v0  ;;  %60 = sbr.rel (%p290_p9) target bundleno = 89 (0x59), region = 21  ;;  %v63_v3 = vld [vmem:[#allocation12 + $0x10] sm:$0xff] (!%p290_p9)  ;;  %v64_v4 = vld [vmem:[#allocation12 + $0x18] sm:$0xff] (!%p290_p9)  ;;  %v65_v7 = vld [vmem:[#allocation12 + $0x20] sm:$0xff] (!%p290_p9)  ;;  %v106_v11 = vmul.f32 (!%p290_p9), %v61_v1, %v61_v1  ;;  %v107_v12 = vmul.f32 (!%p290_p9), %v62_v2, %v62_v2 }
  0x3a   :  { %v76_v5 = vand.u32 (!%p290_p9), 2147483647, %v61_v1  ;;  %v77_v6 = vand.u32 (!%p290_p9), 2147483647, %v62_v2  ;;  %v78_v8 = vand.u32 (!%p290_p9), 2147483647, %v63_v3  ;;  %v108_v16 = vmul.f32 (!%p290_p9), %v63_v3, %v63_v3 }
  0x3b   :  { %v79_v9 = vand.u32 (!%p290_p9), 2147483647, %v64_v4  ;;  %v66_v13 = vld [vmem:[#allocation12 + $0x28] sm:$0xff] (!%p290_p9)  ;;  %v80_v14 = vand.u32 (!%p290_p9), 2147483647, %v65_v7  ;;  %v67_v17 = vld [vmem:[#allocation12 + $0x30] sm:$0xff] (!%p290_p9)  ;;  %v109_v20 = vmul.f32 (!%p290_p9), %v64_v4, %v64_v4  ;;  %v120_v21 = vadd.f32 (!%p290_p9), %v107_v12, %v106_v11 }
  0x3c   :  { %v90_v10 = vadd.f32 (!%p290_p9), %v77_v6, %v76_v5  ;;  %v81_v18 = vand.u32 (!%p290_p9), 2147483647, %v66_v13  ;;  %v68_v22 = vld [vmem:[#allocation12 + $0x38] sm:$0xff] (!%p290_p9)  ;;  %v82_v23 = vand.u32 (!%p290_p9), 2147483647, %v67_v17  ;;  %v110_v25 = vmul.f32 (!%p290_p9), %v65_v7, %v65_v7  ;;  %v69_v27 = vld [vmem:[#allocation12 + $0x40] sm:$0xff] (!%p290_p9) }
  0x3d   :  { %v121_v26 = vadd.f32 (!%p290_p9), %v120_v21, %v108_v16  ;;  %v83_v28 = vand.u32 (!%p290_p9), 2147483647, %v68_v22  ;;  %v111_v30 = vmul.f32 (!%p290_p9), %v66_v13, %v66_v13  ;;  %v70_v32 = vld [vmem:[#allocation12 + $0x48] sm:$0xff] (!%p290_p9)  ;;  %v84_v33 = vand.u32 (!%p290_p9), 2147483647, %v69_v27  ;;  %v71_v37 = vld [vmem:[#allocation12 + $0x50] sm:$0xff] (!%p290_p9) }
  0x3e   :  { %v91_v15 = vadd.f32 (!%p290_p9), %v90_v10, %v78_v8  ;;  %v112_v35 = vmul.f32 (!%p290_p9), %v67_v17, %v67_v17  ;;  %v85_v38 = vand.u32 (!%p290_p9), 2147483647, %v70_v32  ;;  %v113_v40 = vmul.f32 (!%p290_p9), %v68_v22, %v68_v22  ;;  %v72_v42 = vld [vmem:[#allocation12 + $0x58] sm:$0xff] (!%p290_p9)  ;;  %v73_v47 = vld [vmem:[#allocation12 + $0x60] sm:$0xff] (!%p290_p9)  ;;  %v74_v52 = vld [vmem:[#allocation12 + $0x68] sm:$0xff] (!%p290_p9) }
  0x3f   :  { %v122_v31 = vadd.f32 (!%p290_p9), %v121_v26, %v109_v20  ;;  %v86_v43 = vand.u32 (!%p290_p9), 2147483647, %v71_v37  ;;  %v114_v45 = vmul.f32 (!%p290_p9), %v69_v27, %v69_v27  ;;  %v87_v48 = vand.u32 (!%p290_p9), 2147483647, %v72_v42  ;;  %v75_v0 = vld [vmem:[#allocation2] sm:$0xff] (!%p290_p9)  ;;  %v105_v6 = vld [vmem:[#allocation3] sm:$0xff] (!%p290_p9) }
  0x40   :  { %v92_v19 = vadd.f32 %v91_v15, %v79_v9  ;;  %v115_v50 = vmul.f32 %v70_v32, %v70_v32  ;;  %v88_v53 = vand.u32 2147483647, %v73_v47  ;;  %v116_v55 = vmul.f32 %v71_v37, %v71_v37 }
  0x41   :  { %v123_v36 = vadd.f32 %v122_v31, %v110_v25  ;;  %v89_v57 = vand.u32 2147483647, %v74_v52  ;;  %v117_v59 = vmul.f32 %v72_v42, %v72_v42  ;;  %v118_v62 = vmul.f32 %v73_v47, %v73_v47 }
  0x42   :  { %v93_v24 = vadd.f32 %v92_v19, %v80_v14  ;;  %v119_v2 = vmul.f32 %v74_v52, %v74_v52 }
  0x43   :  { %v124_v41 = vadd.f32 %v123_v36, %v111_v30 }
  0x44   :  { %v94_v29 = vadd.f32 %v93_v24, %v81_v18 }
  0x45   :  { %v125_v46 = vadd.f32 %v124_v41, %v112_v35 }
  0x46   :  { %v95_v34 = vadd.f32 %v94_v29, %v82_v23 }
  0x47   :  { %v126_v51 = vadd.f32 %v125_v46, %v113_v40 }
  0x48   :  { %v96_v39 = vadd.f32 %v95_v34, %v83_v28 }
  0x49   :  { %v127_v56 = vadd.f32 %v126_v51, %v114_v45 }
  0x4a   :  { %v97_v44 = vadd.f32 %v96_v39, %v84_v33 }
  0x4b   :  { %v128_v60 = vadd.f32 %v127_v56, %v115_v50 }
  0x4c   :  { %v98_v49 = vadd.f32 %v97_v44, %v85_v38 }
  0x4d   :  { %v129_v63 = vadd.f32 %v128_v60, %v116_v55 }
  0x4e   :  { %v99_v54 = vadd.f32 %v98_v49, %v86_v43 }
  0x4f   :  { %v130_v3 = vadd.f32 %v129_v63, %v117_v59 }
  0x50   :  { %v100_v58 = vadd.f32 %v99_v54, %v87_v48 }
  0x51   :  { %v131_v5 = vadd.f32 %v130_v3, %v118_v62 }
  0x52   :  { %v101_v61 = vadd.f32 %v100_v58, %v88_v53 }
  0x53   :  { %v132_v7 = vadd.f32 %v131_v5, %v119_v2 }
  0x54   :  { %v102_v1 = vadd.f32 %v101_v61, %v89_v57 }
  0x55   :  { %v133_v8 = vadd.f32 %v132_v7, %v105_v6 }
  0x56   :  { %v103_v4 = vadd.f32 %v102_v1, %v75_v0 }
  0x57   :  { %134 = vst [vmem:[#allocation3] sm:$0xff] %v133_v8 }
  0x58   :  { %104 = vst [vmem:[#allocation2] sm:$0xff] %v103_v4 }
  0x59 PF:  { %p291_p10 = scmp.le.s32.totalorder %s551_s0, 0 }
  0x5a   :  { %v139_v9 = vld [vmem:[#allocation12] sm:$0xff] (!%p291_p10)  ;;  %v140_v10 = vld [vmem:[#allocation12 + $0x8] sm:$0xff] (!%p291_p10)  ;;  %v141_v11 = vld [vmem:[#allocation12 + $0x10] sm:$0xff] (!%p291_p10)  ;;  %s518_s1 = sld [smem:[#allocation7]] (!%p291_p10) }
  0x5b   :  { %138 = sbr.rel (%p291_p10) target bundleno = 443 (0x1bb), region = 25  ;;  %v142_v12 = vld [vmem:[#allocation12 + $0x18] sm:$0xff] (!%p291_p10)  ;;  %v154_v13 = vand.u32 (!%p291_p10), 2147483647, %v139_v9  ;;  %v155_v14 = vand.u32 (!%p291_p10), 2147483647, %v140_v10 }
  0x5c   :  { %v143_v15 = vld [vmem:[#allocation12 + $0x20] sm:$0xff] (!%p291_p10)  ;;  %v156_v16 = vand.u32 (!%p291_p10), 2147483647, %v141_v11  ;;  %v157_v17 = vand.u32 (!%p291_p10), 2147483647, %v142_v12  ;;  %v144_v19 = vld [vmem:[#allocation12 + $0x28] sm:$0xff] (!%p291_p10) }
  0x5d   :  { %v168_v18 = vadd.f32 (!%p291_p10), %v155_v14, %v154_v13  ;;  %v158_v20 = vand.u32 (!%p291_p10), 2147483647, %v143_v15  ;;  %v145_v22 = vld [vmem:[#allocation12 + $0x30] sm:$0xff] (!%p291_p10)  ;;  %v159_v23 = vand.u32 (!%p291_p10), 2147483647, %v144_v19  ;;  %v146_v25 = vld [vmem:[#allocation12 + $0x38] sm:$0xff] (!%p291_p10) }
  0x5e   :  { %v160_v26 = vand.u32 (!%p291_p10), 2147483647, %v145_v22  ;;  %v147_v28 = vld [vmem:[#allocation12 + $0x40] sm:$0xff] (!%p291_p10)  ;;  %v161_v29 = vand.u32 (!%p291_p10), 2147483647, %v146_v25  ;;  %v148_v31 = vld [vmem:[#allocation12 + $0x48] sm:$0xff] (!%p291_p10) }
  0x5f   :  { %v169_v21 = vadd.f32 (!%p291_p10), %v168_v18, %v156_v16  ;;  %v162_v32 = vand.u32 (!%p291_p10), 2147483647, %v147_v28  ;;  %v149_v34 = vld [vmem:[#allocation12 + $0x50] sm:$0xff] (!%p291_p10)  ;;  %v163_v35 = vand.u32 (!%p291_p10), 2147483647, %v148_v31  ;;  %v150_v37 = vld [vmem:[#allocation12 + $0x58] sm:$0xff] (!%p291_p10) }
  0x60   :  { %v164_v38 = vand.u32 (!%p291_p10), 2147483647, %v149_v34  ;;  %v151_v40 = vld [vmem:[#allocation12 + $0x60] sm:$0xff] (!%p291_p10)  ;;  %v165_v41 = vand.u32 (!%p291_p10), 2147483647, %v150_v37  ;;  %v152_v43 = vld [vmem:[#allocation12 + $0x68] sm:$0xff] (!%p291_p10) }
  0x61   :  { %v170_v24 = vadd.f32 (!%p291_p10), %v169_v21, %v157_v17  ;;  %v166_v44 = vand.u32 (!%p291_p10), 2147483647, %v151_v40  ;;  %v167_v46 = vand.u32 (!%p291_p10), 2147483647, %v152_v43  ;;  %v153_v49 = vld [vmem:[#allocation2] sm:$0xff] (!%p291_p10) }
  0x62   :  { %s524_s2 = smov (!%p291_p10), 0  }
  0x63   :  { %v171_v27 = vadd.f32 %v170_v24, %v158_v20 }
  0x65   :  { %v172_v30 = vadd.f32 %v171_v27, %v159_v23 }
  0x67   :  { %v173_v33 = vadd.f32 %v172_v30, %v160_v26 }
  0x69   :  { %v174_v36 = vadd.f32 %v173_v33, %v161_v29 }
  0x6b   :  { %v175_v39 = vadd.f32 %v174_v36, %v162_v32 }
  0x6d   :  { %v176_v42 = vadd.f32 %v175_v39, %v163_v35 }
  0x6f   :  { %v177_v45 = vadd.f32 %v176_v42, %v164_v38 }
  0x71   :  { %v178_v47 = vadd.f32 %v177_v45, %v165_v41 }
  0x73   :  { %v179_v48 = vadd.f32 %v178_v47, %v166_v44  ;;  %287 = sbr.rel (%p291_p10) target bundleno = 443 (0x1bb), region = 72 }
  0x75   :  { %v180_v50 = vadd.f32 %v179_v48, %v167_v46 }
  0x77   :  { %v181_v51 = vadd.f32 %v180_v50, %v153_v49 }
  0x79   :  { %182 = vst [vmem:[#allocation2] sm:$0xff] %v181_v51 }
  0x7a LB: > { %s190_s3 = sadd.s32 %s425_s2, %s518_s1  ;;  %s425_s2 = sphi %s524_s2, %s187_s2  }
  0x7b   : > { %s191_s13 = sld [smem:[#allocation8 + %s190_s3]] }
  0x7c   : > { %s192_s14 = sld [smem:[#allocation9 + %s190_s3]] }
  0x82   : > { %s193_s4 = ssub.s32 %s192_s14, %s191_s13 }
  0x83   : > { %p293_p11 = scmp.le.s32.totalorder %s193_s4, 0 }
  0x84   : > { %s427_s15 = smov (!%p293_p11), 0  }
  0x85   : > { %282 = sbr.rel (%p293_p11) target bundleno = 151 (0x97), region = 61 }
  0x8c LB: >> { %s200_s16 = sadd.s32 %s429_s15, %s191_s13  ;;  %v205_v56 = vld [vmem:[#allocation3] sm:$0xff]  ;;  %s197_s15 = sadd.s32 1, %s429_s15   ;;  %s429_s15 = sphi %s427_s15, %s197_s15  }
  0x8d   : >> { %s294_s17 = sshll.u32 %s200_s16, 4  ;;  %p196_p12 = scmp.ge.s32.totalorder %s197_s15, %s193_s4 }
  0x8e   : >> { %s202_s18 = scalar_lea.vmem [#allocation12], %s294_s17 }
  0x8f   : >> { %v203_v52 = vld [vmem:[%s202_s18] sm:$0xff]  ;;  %v204_v53 = vld [vmem:[%s202_s18 + $0x8] sm:$0xff] }
  0x90   : >> { %v206_v54 = vmul.f32 %v203_v52, %v203_v52  ;;  %v207_v55 = vmul.f32 %v204_v53, %v204_v53  ;;  %199 = sbr.rel (!%p196_p12) target bundleno = 140 (0x8c), region = 67 }
  0x92   : >> { %v208_v57 = vadd.f32 %v207_v55, %v206_v54 }
  0x94   : >> { %v209_v58 = vadd.f32 %v208_v57, %v205_v56 }
  0x96   : >> { %210 = vst [vmem:[#allocation3] sm:$0xff] %v209_v58 }
  0x97 PF: > { %s211_s19 = sld [smem:[#allocation10 + %s190_s3]] }
  0x9d   : > { %p295_p13 = scmp.ne.s32.totalorder %s211_s19, 1 }
  0x9e   : > { %v217_v59 = vld [vmem:[#allocation3] sm:$0xff] (!%p295_p13)  ;;  %v438_v60 = vmov (!%p295_p13), 0.0   ;;  %v216_v10 = vld [vmem:[#allocation4] sm:$0x1] (!%p295_p13) }
  0x9f   : > { %215 = sbr.rel (%p295_p13) target bundleno = 433 (0x1b1), region = 43  ;;  %218 = vadd.xlane.f32.xlu0 (!%p295_p13), %v217_v59  ;;  %240 = vst [vmem:[#allocation3] sm:$0xff] (!%p295_p13), %v438_v60 }
 0x12c   : > { %v219_v61 = vpop.xlane.xlu0 %218 }
 0x12d   : > { %v220_v62 = vrot.slane %v219_v61, 4 }
 0x12f   : > { %v221_v63 = vadd.f32 %v220_v62, %v219_v61 }
 0x131   : > { %v222_v0 = vrot.slane %v221_v63, 2 }
 0x133   : > { %v223_v1 = vadd.f32 %v222_v0, %v221_v63 }
 0x135   : > { %v224_v2 = vrot.slane %v223_v1, 1 }
 0x137   : > { %v225_v3 = vadd.f32 %v224_v2, %v223_v1 }
 0x139   : > { %296 = vpush %v225_v3 }
 0x16a   : > { %s297_s20 = spop %296 }
 0x16b   : > { %v227_v4 = vstv %s297_s20 }
 0x16c   : > { %327 = vrsqrt.f32 %v227_v4  ;;  %vm230_vm1 = vcmp.eq.f32.partialorder %v227_v4, inf  ;;  %v233_v7 = vand.u32 2147483648, %v227_v4  ;;  %vm232_vm2 = vcmp.eq.f32.partialorder %v227_v4, 0.0 }
 0x176   : > { %v328_v5 = vpop.eup %327 }
 0x177   : > { %v229_v6 = vmul.f32 %v328_v5, %v227_v4 }
 0x179   : > { %v231_v8 = vsel %vm230_vm1, %v227_v4, %v229_v6 }
 0x17a   : > { %v234_v9 = vsel %vm232_vm2, %v233_v7, %v231_v8 }
 0x17b   : > { %298 = vpush %v234_v9 }
 0x1ac   : > { %s299_s21 = spop %298 }
 0x1ad   : > { %v236_v11 = vstv %s299_s21 }
 0x1ae   : > { %v237_v12 = vadd.f32 %v236_v11, %v216_v10 }
 0x1b0   : > { %239 = vst.msk [vmem:[#allocation4] sm:$0x1] %vm54_vm0, %v237_v12 }
 0x1b1 PF: > { %s187_s2 = sadd.s32 1, %s425_s2  }
 0x1b2   : > { %p186_p0 = scmp.ge.s32.totalorder %s187_s2, %s551_s0 }
 0x1b4   :  { %189 = sbr.rel (!%p186_p0) target bundleno = 122 (0x7a), region = 78 }
 0x1bb PF:  { %s244_s24 = sld [smem:[#allocation11]]  ;;  %v255_v21 = vld [vmem:[#allocation4] sm:$0x1]  ;;  %s439_s25 = smov [#allocation15]  }
 0x1bc   :  { %s268_s26 = sshll.u32 %s439_s25, 4  ;;  %s269_s26 = int_to_ptr.vmem [resolvable:$true] %s268_s26 }
 0x1bd   :  { %s387_s0 = scalar_lea.vmem %s269_s26, 16  ;;  %s391_s27 = scalar_lea.vmem %s269_s26, 32 }
 0x1be   :  { %p388_p1 = scmp.ne.s32.totalorder %s269_s26, %s387_s0  ;;  %p392_p2 = scmp.lt.s32.totalorder %s269_s26, %s269_s26 }
 0x1bf   :  { %p393_p3 = scmp.lt.s32.totalorder %s391_s27, %s387_s0 }
 0x1c1   :  { %v245_v13 = vld [vmem:[#allocation2] sm:$0xff]  ;;  %v258_v23 = vstv %s244_s24  ;;  %p394_p4 = por %p393_p3, %p392_p2 }
 0x1c2   :  { %246 = vadd.xlane.f32.xlu0 %v245_v13 }
 0x1c3   :  { %p395_p5 = pnand %p394_p4, %p388_p1 }
 0x24f   :  { %v247_v14 = vpop.xlane.xlu0 %246 }
 0x250   :  { %v248_v15 = vrot.slane %v247_v14, 4 }
 0x252   :  { %v249_v16 = vadd.f32 %v248_v15, %v247_v14 }
 0x254   :  { %v250_v17 = vrot.slane %v249_v16, 2 }
 0x256   :  { %v251_v18 = vadd.f32 %v250_v17, %v249_v16 }
 0x258   :  { %v252_v19 = vrot.slane %v251_v18, 1 }
 0x25a   :  { %v253_v20 = vadd.f32 %v252_v19, %v251_v18 }
 0x25c   :  { %300 = vpush %v253_v20 }
 0x28d   :  { %s301_s5 = spop %300 }
 0x28e   :  { %v256_v22 = vstv %s301_s5 }
 0x28f   :  { %v257_v24 = vadd.f32 %v256_v22, %v255_v21 }
 0x291   :  { %v259_v25 = vmul.f32 %v258_v23, %v257_v24 }
 0x293   :  { %261 = vst.msk [vmem:[#allocation15] sm:$0x1] %vm54_vm0, %v259_v25 }
 0x294   :  { %398 = shalt.err (!%p395_p5)
}
 0x295   :  { %s399_s30 = scalar_lea.hbm %s555_s7, 16 }
 0x296   :  { %p400_p6 = scmp.ne.s32.totalorder %s555_s7, %s399_s30  ;;  %p403_p7 = scmp.lt.u32.totalorder %s399_s30, %s555_s7 }
 0x298   :  { %p405_p8 = pnand %p403_p7, %p400_p6 }
 0x29a   :  { %408 = shalt.err (!%p405_p8)
}
 0x29b   :  { %271 = dma.vmem_to_hbm [thread:$0]  %s269_s26, 16, %s555_s7, [#allocation14]  }
 0x29c   :  { %421 = dma.done.wait [#allocation14], 16  }
 0x29d   :  { %422 = vsyncadd [#allocation14], 4294967280 }
 0x29e   :  { %275 = vsyncpa [#allocation13], 1 }
 0x29f   :  { %276 = vsyncpa [#allocation14], 1 }

</bundles_post_ra>
